<compile_context>
chip_gen: v6e
topology: v6e:2x2x1
jax: 0.10.0
libtpu: 0.0.40
codegen_flags: <defaults>
</compile_context>

<pallas_src>
import functools

import jax
import jax.numpy as jnp
from jax.experimental import pallas as pl
from jax.experimental.pallas import tpu as pltpu

OUT_PAD = 128  # lane-dense output slab width (unmasked vst)


def _round_up(x, m):
    return (x + m - 1) // m * m


def _choose_tiling(batch, max_tile=1024):
    """Pick (tile_b, padded_batch): even #tiles >= 2 (v7x megacore), tiles <= max_tile."""
    b8 = _round_up(max(batch, 1), 8)
    n_tiles = max(2, -(-b8 // max_tile))
    n_tiles = _round_up(n_tiles, 2)
    tb = _round_up(-(-b8 // n_tiles), 8)
    return tb, tb * n_tiles


def _qpolicy_kernel(x_ref, u_ref, w1_ref, b1_ref, w2_ref, b2_ref, w3_ref, b3_ref,
                    fused_ref, sel_ref, out_ref, *, ag):
    # ---- 3-layer MLP: bf16 operands on the MXU, f32 accumulation, f32 bias + ReLU ----
    h1 = jnp.maximum(
        jnp.dot(x_ref[...], w1_ref[...], preferred_element_type=jnp.float32)
        + b1_ref[...], 0.0)
    h2 = jnp.maximum(
        jnp.dot(h1.astype(jnp.bfloat16), w2_ref[...],
                preferred_element_type=jnp.float32) + b2_ref[...], 0.0)
    p = jnp.maximum(
        jnp.dot(h2.astype(jnp.bfloat16), w3_ref[...],
                preferred_element_type=jnp.float32) + b3_ref[...], 0.0)
    # p: (TILE_B, AG) unnormalized bucket probabilities, already >= 0.

    # ---- Inverse-CDF categorical sample per (row, action) group, on the MXU ----
    # One fused dot gives [within-group inclusive cumsum | group total] in 2*AG lanes.
    ct = jnp.dot(p.astype(jnp.bfloat16), fused_ref[...],
                 preferred_element_type=jnp.float32)          # (TILE_B, 2*AG)
    cdf = ct[:, :ag]
    tot = ct[:, ag:]
    # sampled bucket index = #{ j in group : cdf_j < u * total },  u in (0, 1)
    ind = (cdf < u_ref[...] * tot).astype(jnp.bfloat16)
    # per-group count scattered into a lane-dense 128-wide slab (0/1 bf16 dot, exact)
    counts = jnp.dot(ind, sel_ref[...], preferred_element_type=jnp.float32)  # (TILE_B, 128)
    out_ref[...] = counts.astype(out_ref.dtype)   # integer counts, exact in bf16


def qpolicy_forward(state, params, key, *, action_size, granularity, max_tile=1024):
    """state: (B, state_size) -> (B, action_size) f32 action values in [-1, 1)."""
    B, S = state.shape
    A, G = action_size, granularity
    AG = A * G
    w1, b1, w2, b2, w3, b3 = params
    F1, F2 = w1.shape[1], w2.shape[1]

    tb, B_pad = _choose_tiling(B, max_tile)
    grid = (B_pad // tb,)

    x = state.astype(jnp.bfloat16)
    if B_pad != B:
        x = jnp.pad(x, ((0, B_pad - B), (0, 0)))

    # One uniform in (0, 1) per (row, action), broadcast over that action's G buckets.
    u = jax.random.uniform(key, (B_pad, A), dtype=jnp.float32,
                           minval=float(jnp.finfo(jnp.float32).tiny), maxval=1.0)
    u = jnp.repeat(u, G, axis=1)                                        # (B_pad, AG) f32

    # Constant sampling matrices (0/1 -> exact in bf16).
    j = jnp.arange(AG)
    grp = j // G
    same = grp[:, None] == grp[None, :]
    cum = same & (j[:, None] <= j[None, :])                             # cumsum mask
    fused = jnp.concatenate([cum, same], axis=1).astype(jnp.bfloat16)   # (AG, 2*AG)
    cols = jnp.arange(OUT_PAD)
    sel = (cols[None, :] == grp[:, None]).astype(jnp.bfloat16)          # (AG, 128)

    # bf16 weights (native MXU path on v5e/v6e/v7x; no int8 -- v7x MXU dropped it).
    w1b, w2b, w3b = (w.astype(jnp.bfloat16) for w in (w1, w2, w3))
    b1f, b2f, b3f = (b.astype(jnp.float32) for b in (b1, b2, b3))

    tiled = lambda shape: pl.BlockSpec(shape, lambda i: (i, 0))      # batch-tiled operands
    resident = lambda shape: pl.BlockSpec(shape, lambda i: (0, 0))   # VMEM-resident constants

    flops = 2 * B_pad * (S * F1 + F1 * F2 + F2 * AG + AG * (2 * AG) + AG * OUT_PAD)
    bytes_accessed = int(
        x.size * x.dtype.itemsize + u.size * 4 + B_pad * OUT_PAD * 2
        + sum(int(a.size) * a.dtype.itemsize
              for a in (w1b, b1f, w2b, b2f, w3b, b3f, fused, sel)))

    counts_pad = pl.pallas_call(
        functools.partial(_qpolicy_kernel, ag=AG),
        out_shape=jax.ShapeDtypeStruct((B_pad, OUT_PAD), jnp.bfloat16),
        grid=grid,
        in_specs=[
            tiled((tb, S)),                        # state tile (bf16)
            tiled((tb, AG)),                       # per-(row, action) uniforms (f32)
            resident((S, F1)), resident((1, F1)),  # fc1
            resident((F1, F2)), resident((1, F2)), # fc2
            resident((F2, AG)), resident((1, AG)), # fc3
            resident((AG, 2 * AG)),                # fused [cumsum | group-sum] matrix
            resident((AG, OUT_PAD)),               # group -> lane-dense output scatter
        ],
        out_specs=tiled((tb, OUT_PAD)),
        compiler_params=pltpu.CompilerParams(
            dimension_semantics=("parallel",),
            vmem_limit_bytes=32 * 1024 * 1024),
        cost_estimate=pl.CostEstimate(
            flops=flops, transcendentals=0, bytes_accessed=bytes_accessed),
    )(x, u, w1b, b1f, w2b, b2f, w3b, b3f, fused, sel)

    # Clamp the count==G rounding edge to bucket G-1, then map k -> k/G*2 - 1.
    k = jnp.minimum(counts_pad[:B, :A].astype(jnp.float32), float(G - 1))
    return k * (2.0 / G) - 1.0


def init_params(key, state_size, action_size, granularity, fc1_units=32, fc2_units=16):
    """Deterministic init mimicking nn.Linear's U(-1/sqrt(fan_in), 1/sqrt(fan_in))."""
    def linear(k, fan_in, fan_out):
        kw, kb = jax.random.split(k)
        bound = 1.0 / jnp.sqrt(float(fan_in))
        w = jax.random.uniform(kw, (fan_in, fan_out), jnp.float32, -bound, bound)
        b = jax.random.uniform(kb, (1, fan_out), jnp.float32, -bound, bound)
        return w, b

    k1, k2, k3 = jax.random.split(key, 3)
    w1, b1 = linear(k1, state_size, fc1_units)
    w2, b2 = linear(k2, fc1_units, fc2_units)
    w3, b3 = linear(k3, fc2_units, action_size * granularity)
    return (w1, b1, w2, b2, w3, b3)


if __name__ == "__main__":
    state_size = 8
    action_size = 4
    granularity = 8
    batch = 2

    key = jax.random.PRNGKey(0)
    k_params, k_state, k_sample = jax.random.split(key, 3)
    params = init_params(k_params, state_size, action_size, granularity)
    state = jax.random.normal(k_state, (batch, state_size), dtype=jnp.float32)

    out = qpolicy_forward(state, params, k_sample,
                          action_size=action_size, granularity=granularity)
    out = jax.block_until_ready(out)

    assert out.shape == (batch, action_size)
    assert bool(jnp.all(out >= -1.0)) and bool(jnp.all(out < 1.0))
    # outputs must lie on the bucket lattice k/G*2 - 1
    k = (out + 1.0) * granularity / 2.0
    assert bool(jnp.all(jnp.abs(k - jnp.round(k)) < 1e-3))
    print("KERNEL_OK")
</pallas_src>

<mosaic_0001>
module attributes {stable_mosaic.version = 11 : i64} {
  func.func @_qpolicy_kernel(%arg0: i32, %arg1: memref<8x8xbf16, #tpu.memory_space<vmem>>, %arg2: memref<8x32xf32, #tpu.memory_space<vmem>>, %arg3: memref<8x32xbf16, #tpu.memory_space<vmem>>, %arg4: memref<1x32xf32, #tpu.memory_space<vmem>>, %arg5: memref<32x16xbf16, #tpu.memory_space<vmem>>, %arg6: memref<1x16xf32, #tpu.memory_space<vmem>>, %arg7: memref<16x32xbf16, #tpu.memory_space<vmem>>, %arg8: memref<1x32xf32, #tpu.memory_space<vmem>>, %arg9: memref<32x64xbf16, #tpu.memory_space<vmem>>, %arg10: memref<32x128xbf16, #tpu.memory_space<vmem>>, %arg11: memref<8x128xbf16, #tpu.memory_space<vmem>>) attributes {dimension_semantics = [#tpu.dimension_semantics<parallel>], iteration_bounds = array<i64: 2>, scalar_prefetch = 0 : i64, scratch_operands = 0 : i64, tpu.core_type = #tpu.core_type<tc>, window_params = [{transform_indices = @transform_0, window_bounds = array<i64: 8, 8>}, {transform_indices = @transform_1, window_bounds = array<i64: 8, 32>}, {pipeline_mode = #tpu.pipeline_mode<synchronous>, transform_indices = @transform_2, window_bounds = array<i64: 8, 32>}, {pipeline_mode = #tpu.pipeline_mode<synchronous>, transform_indices = @transform_3, window_bounds = array<i64: 1, 32>}, {pipeline_mode = #tpu.pipeline_mode<synchronous>, transform_indices = @transform_4, window_bounds = array<i64: 32, 16>}, {pipeline_mode = #tpu.pipeline_mode<synchronous>, transform_indices = @transform_5, window_bounds = array<i64: 1, 16>}, {pipeline_mode = #tpu.pipeline_mode<synchronous>, transform_indices = @transform_6, window_bounds = array<i64: 16, 32>}, {pipeline_mode = #tpu.pipeline_mode<synchronous>, transform_indices = @transform_7, window_bounds = array<i64: 1, 32>}, {pipeline_mode = #tpu.pipeline_mode<synchronous>, transform_indices = @transform_8, window_bounds = array<i64: 32, 64>}, {pipeline_mode = #tpu.pipeline_mode<synchronous>, transform_indices = @transform_9, window_bounds = array<i64: 32, 128>}, {transform_indices = @transform_10, window_bounds = array<i64: 8, 128>}]} {
    %c0 = arith.constant 0 : index
    %c0_0 = arith.constant 0 : index
    %0 = vector.load %arg1[%c0, %c0_0] : memref<8x8xbf16, #tpu.memory_space<vmem>>, vector<8x8xbf16>
    %c0_1 = arith.constant 0 : index
    %c0_2 = arith.constant 0 : index
    %1 = vector.load %arg3[%c0_1, %c0_2] : memref<8x32xbf16, #tpu.memory_space<vmem>>, vector<8x32xbf16>
    %cst = arith.constant dense<0.000000e+00> : vector<8x32xf32>
    %2 = tpu.matmul %0, %1, %cst {dimension_numbers = #tpu.dot_dimension_numbers<[1], [0], [0], [1], [0, 0, 1, 1], [], []>} : vector<8x8xbf16>, vector<8x32xbf16>, vector<8x32xf32> -> vector<8x32xf32>
    %c0_3 = arith.constant 0 : index
    %c0_4 = arith.constant 0 : index
    %3 = vector.load %arg4[%c0_3, %c0_4] : memref<1x32xf32, #tpu.memory_space<vmem>>, vector<1x32xf32>
    %4 = vector.broadcast %3 : vector<1x32xf32> to vector<8x32xf32>
    %5 = arith.addf %2, %4 : vector<8x32xf32>
    %cst_5 = arith.constant 0.000000e+00 : f32
    %6 = vector.broadcast %cst_5 : f32 to vector<8x32xf32>
    %7 = arith.maximumf %5, %6 : vector<8x32xf32>
    %8 = arith.truncf %7 : vector<8x32xf32> to vector<8x32xbf16>
    %c0_6 = arith.constant 0 : index
    %c0_7 = arith.constant 0 : index
    %9 = vector.load %arg5[%c0_6, %c0_7] : memref<32x16xbf16, #tpu.memory_space<vmem>>, vector<32x16xbf16>
    %cst_8 = arith.constant dense<0.000000e+00> : vector<8x16xf32>
    %10 = tpu.matmul %8, %9, %cst_8 {dimension_numbers = #tpu.dot_dimension_numbers<[1], [0], [0], [1], [0, 0, 1, 1], [], []>} : vector<8x32xbf16>, vector<32x16xbf16>, vector<8x16xf32> -> vector<8x16xf32>
    %c0_9 = arith.constant 0 : index
    %c0_10 = arith.constant 0 : index
    %11 = vector.load %arg6[%c0_9, %c0_10] : memref<1x16xf32, #tpu.memory_space<vmem>>, vector<1x16xf32>
    %12 = vector.broadcast %11 : vector<1x16xf32> to vector<8x16xf32>
    %13 = arith.addf %10, %12 : vector<8x16xf32>
    %cst_11 = arith.constant 0.000000e+00 : f32
    %14 = vector.broadcast %cst_11 : f32 to vector<8x16xf32>
    %15 = arith.maximumf %13, %14 : vector<8x16xf32>
    %16 = arith.truncf %15 : vector<8x16xf32> to vector<8x16xbf16>
    %c0_12 = arith.constant 0 : index
    %c0_13 = arith.constant 0 : index
    %17 = vector.load %arg7[%c0_12, %c0_13] : memref<16x32xbf16, #tpu.memory_space<vmem>>, vector<16x32xbf16>
    %cst_14 = arith.constant dense<0.000000e+00> : vector<8x32xf32>
    %18 = tpu.matmul %16, %17, %cst_14 {dimension_numbers = #tpu.dot_dimension_numbers<[1], [0], [0], [1], [0, 0, 1, 1], [], []>} : vector<8x16xbf16>, vector<16x32xbf16>, vector<8x32xf32> -> vector<8x32xf32>
    %c0_15 = arith.constant 0 : index
    %c0_16 = arith.constant 0 : index
    %19 = vector.load %arg8[%c0_15, %c0_16] : memref<1x32xf32, #tpu.memory_space<vmem>>, vector<1x32xf32>
    %20 = vector.broadcast %19 : vector<1x32xf32> to vector<8x32xf32>
    %21 = arith.addf %18, %20 : vector<8x32xf32>
    %cst_17 = arith.constant 0.000000e+00 : f32
    %22 = vector.broadcast %cst_17 : f32 to vector<8x32xf32>
    %23 = arith.maximumf %21, %22 : vector<8x32xf32>
    %24 = arith.truncf %23 : vector<8x32xf32> to vector<8x32xbf16>
    %c0_18 = arith.constant 0 : index
    %c0_19 = arith.constant 0 : index
    %25 = vector.load %arg9[%c0_18, %c0_19] : memref<32x64xbf16, #tpu.memory_space<vmem>>, vector<32x64xbf16>
    %cst_20 = arith.constant dense<0.000000e+00> : vector<8x64xf32>
    %26 = tpu.matmul %24, %25, %cst_20 {dimension_numbers = #tpu.dot_dimension_numbers<[1], [0], [0], [1], [0, 0, 1, 1], [], []>} : vector<8x32xbf16>, vector<32x64xbf16>, vector<8x64xf32> -> vector<8x64xf32>
    %27 = vector.extract_strided_slice %26 {offsets = [0, 0], sizes = [8, 32], strides = [1, 1]} : vector<8x64xf32> to vector<8x32xf32>
    %28 = vector.extract_strided_slice %26 {offsets = [0, 32], sizes = [8, 32], strides = [1, 1]} : vector<8x64xf32> to vector<8x32xf32>
    %c0_21 = arith.constant 0 : index
    %c0_22 = arith.constant 0 : index
    %29 = vector.load %arg2[%c0_21, %c0_22] : memref<8x32xf32, #tpu.memory_space<vmem>>, vector<8x32xf32>
    %30 = arith.mulf %29, %28 : vector<8x32xf32>
    %31 = arith.cmpf olt, %27, %30 : vector<8x32xf32>
    %32 = arith.extui %31 : vector<8x32xi1> to vector<8x32xi32>
    %33 = arith.sitofp %32 : vector<8x32xi32> to vector<8x32xf32>
    %34 = arith.truncf %33 : vector<8x32xf32> to vector<8x32xbf16>
    %c0_23 = arith.constant 0 : index
    %c0_24 = arith.constant 0 : index
    %35 = vector.load %arg10[%c0_23, %c0_24] : memref<32x128xbf16, #tpu.memory_space<vmem>>, vector<32x128xbf16>
    %cst_25 = arith.constant dense<0.000000e+00> : vector<8x128xf32>
    %36 = tpu.matmul %34, %35, %cst_25 {dimension_numbers = #tpu.dot_dimension_numbers<[1], [0], [0], [1], [0, 0, 1, 1], [], []>} : vector<8x32xbf16>, vector<32x128xbf16>, vector<8x128xf32> -> vector<8x128xf32>
    %37 = arith.truncf %36 : vector<8x128xf32> to vector<8x128xbf16>
    %c0_26 = arith.constant 0 : index
    %c0_27 = arith.constant 0 : index
    %38 = vector.load %arg11[%c0_26, %c0_27] : memref<8x128xbf16, #tpu.memory_space<vmem>>, vector<8x128xbf16>
    tpu.vector_store %arg11[%c0_26, %c0_27], %37 {strides = array<i32>} : memref<8x128xbf16, #tpu.memory_space<vmem>>, vector<8x128xbf16>,
    return
  }
  func.func @transform_0(%arg0: i32) -> (i32, i32) {
    %c0_i32 = arith.constant 0 : i32
    %c0_i32_0 = arith.constant 0 : i32
    return %arg0, %c0_i32 : i32, i32
  }
  func.func @transform_1(%arg0: i32) -> (i32, i32) {
    %c0_i32 = arith.constant 0 : i32
    %c0_i32_0 = arith.constant 0 : i32
    return %arg0, %c0_i32 : i32, i32
  }
  func.func @transform_2(%arg0: i32) -> (i32, i32) {
    %c0_i32 = arith.constant 0 : i32
    %c0_i32_0 = arith.constant 0 : i32
    %c0_i32_1 = arith.constant 0 : i32
    return %c0_i32, %c0_i32_0 : i32, i32
  }
  func.func @transform_3(%arg0: i32) -> (i32, i32) {
    %c0_i32 = arith.constant 0 : i32
    %c0_i32_0 = arith.constant 0 : i32
    %c0_i32_1 = arith.constant 0 : i32
    return %c0_i32, %c0_i32_0 : i32, i32
  }
  func.func @transform_4(%arg0: i32) -> (i32, i32) {
    %c0_i32 = arith.constant 0 : i32
    %c0_i32_0 = arith.constant 0 : i32
    %c0_i32_1 = arith.constant 0 : i32
    return %c0_i32, %c0_i32_0 : i32, i32
  }
  func.func @transform_5(%arg0: i32) -> (i32, i32) {
    %c0_i32 = arith.constant 0 : i32
    %c0_i32_0 = arith.constant 0 : i32
    %c0_i32_1 = arith.constant 0 : i32
    return %c0_i32, %c0_i32_0 : i32, i32
  }
  func.func @transform_6(%arg0: i32) -> (i32, i32) {
    %c0_i32 = arith.constant 0 : i32
    %c0_i32_0 = arith.constant 0 : i32
    %c0_i32_1 = arith.constant 0 : i32
    return %c0_i32, %c0_i32_0 : i32, i32
  }
  func.func @transform_7(%arg0: i32) -> (i32, i32) {
    %c0_i32 = arith.constant 0 : i32
    %c0_i32_0 = arith.constant 0 : i32
    %c0_i32_1 = arith.constant 0 : i32
    return %c0_i32, %c0_i32_0 : i32, i32
  }
  func.func @transform_8(%arg0: i32) -> (i32, i32) {
    %c0_i32 = arith.constant 0 : i32
    %c0_i32_0 = arith.constant 0 : i32
    %c0_i32_1 = arith.constant 0 : i32
    return %c0_i32, %c0_i32_0 : i32, i32
  }
  func.func @transform_9(%arg0: i32) -> (i32, i32) {
    %c0_i32 = arith.constant 0 : i32
    %c0_i32_0 = arith.constant 0 : i32
    %c0_i32_1 = arith.constant 0 : i32
    return %c0_i32, %c0_i32_0 : i32, i32
  }
  func.func @transform_10(%arg0: i32) -> (i32, i32) {
    %c0_i32 = arith.constant 0 : i32
    %c0_i32_0 = arith.constant 0 : i32
    return %arg0, %c0_i32 : i32, i32
  }
}

</mosaic_0001>

<bundles_post_ra>
// kernel: tpu_custom_call.1
= control target key start
LH: loop header
LB: loop body
LE: loop exit
PB: predicated region body
PF: predicated region fallthrough
CT: control target
= control target key end

     0   :  { %s1571_s0 = inlined_call_operand.vmem [shape: bf16[16,8], index: 0, kind: input, shape index: {}]   ;;  %s1572_s1 = inlined_call_operand.vmem [shape: f32[16,32], index: 1, kind: input, shape index: {}]   ;;  %s1573_s2 = inlined_call_operand.hbm [shape: bf16[8,32], index: 2, kind: input, shape index: {}]   ;;  %s1574_s3 = inlined_call_operand.hbm [shape: f32[1,32], index: 3, kind: input, shape index: {}]   ;;  %s1575_s4 = inlined_call_operand.vmem [shape: bf16[32,16], index: 4, kind: input, shape index: {}]   ;;  %s1576_s5 = inlined_call_operand.hbm [shape: f32[1,16], index: 5, kind: input, shape index: {}]   ;;  %s1577_s6 = inlined_call_operand.hbm [shape: bf16[16,32], index: 6, kind: input, shape index: {}]   ;;  %s1578_s7 = inlined_call_operand.hbm [shape: f32[1,32], index: 7, kind: input, shape index: {}]   ;;  %s1579_s8 = inlined_call_operand.vmem [shape: bf16[32,64], index: 8, kind: input, shape index: {}]   ;;  %s1580_s9 = inlined_call_operand.vmem [shape: bf16[32,128], index: 9, kind: input, shape index: {}]   ;;  %s1581_s10 = inlined_call_operand.hbm [shape: bf16[16,128], index: 10, kind: output, shape index: {}]  }
   0x1   :  { %1584 = sst [smem:[#allocation16_spill]] %s1574_s3 }
   0x2   :  { %15 = vsyncpa [#allocation3], 0 }
   0x3   :  { %16 = vsyncpa [#allocation6], 0 }
   0x4   :  { %17 = vsyncpa [#allocation9], 0 }
   0x5   :  { %18 = vsyncpa [#allocation4], 0 }
   0x6   :  { %20 = vsyncpa [#allocation4 + $0x1], 0  ;;  %s1350_s13 = smov 0   ;;  %s1352_s14 = smov 0  }
   0x7   :  { %s1354_s15 = smov 0   ;;  %s1356_s16 = smov 0  }
   0x8 LB: > { %s1371_s17 = sadd.s32 4294967295, %s1282_s16   ;;  %s892_s18 = sadd.s32 4294967294, %s1282_s16   ;;  %s1282_s16 = sphi %s1356_s16, %s1602_s16   ;;  %s1278_s15 = sphi %s1354_s15, %s1601_s15   ;;  %s1274_s14 = sphi %s1352_s14, %s1600_s14   ;;  %s1270_s13 = sphi %s1350_s13, %s1599_s13  }
   0x9   : > { %s1375_s19 = sadd.s32 1, %s1282_s16   ;;  %s253_s20 = sadd.s32 1, %s1278_s15 }
   0xa   : > { %s250_s21 = ssub.s32 %s1282_s16, %s1375_s19  ;;  %p263_p0 = scmp.ne.s32.totalorder %s1278_s15, %s1274_s14 }
   0xb   : > { %p251_p1 = scmp.eq.s32.totalorder %s250_s21, 0  ;;  %p264_p2 = scmp.eq.s32.totalorder %s1371_s17, 1 }
   0xc   : > { %p269_p3 = scmp.ne.s32.totalorder %s1274_s14, %s1270_s13  ;;  %p270_p4 = scmp.eq.s32.totalorder %s892_s18, 1 }
   0xd   : > { %s1386_s22 = scalar_select %p251_p1, %s1278_s15, %s253_s20  }
   0xe   : > { %p1388_p5 = por %p264_p2, %p263_p0  ;;  %p1392_p6 = por %p270_p4, %p269_p3 }
   0xf   : > { %p893_p7 = scmp.ge.s32.totalorder %s1282_s16, 1  ;;  %p277_p8 = scmp.lt.s32.totalorder %s1282_s16, 3 }
  0x10   : > { %s1585_s23 = scalar_select %p1388_p5, 1, 0 }
  0x11   : > { %s1586_s24 = scalar_select %p1392_p6, 1, 0 }
  0x12   : > { %p1582_p9 = scmp.eq.s32.totalorder %s1371_s17, 0  ;;  %p1399_p10 = pnand %p893_p7, %p277_p8 }
  0x13   : > { %s1284_s26 = smov [#allocation5]   ;;  %s1285_s28 = smov [#allocation8]  }
  0x14   : > { %s301_s27 = sshll.u32 %s1284_s26, 4  ;;  %p1000_p11 = pneg %p1399_p10  ;;  %s302_s27 = int_to_ptr.vmem [resolvable:$true] %s301_s27 }
  0x15   : > { %s325_s29 = sshll.u32 %s1285_s28, 4  ;;  %s1286_s11 = smov [#allocation2]   ;;  %s1411_s29 = int_to_ptr.vmem [resolvable:$true] %s325_s29 }
  0x16   : > { %p1407_p12 = pnand %p1582_p9, %p1000_p11  ;;  %s290_s12 = sshll.u32 %s1286_s11, 4  ;;  %s291_s12 = int_to_ptr.vmem [resolvable:$true] %s290_s12 }
  0x17   : > { %s1091_s20 = scalar_lea.vmem %s302_s27, 16  ;;  %s1098_s21 = scalar_lea.vmem %s302_s27, 32 }
  0x18   : > { %p1415_p13 = pneg %p1407_p12  ;;  %p1092_p0 = scmp.ne.s32.totalorder %s302_s27, %s1091_s20 }
  0x19   : > { %p1099_p3 = scmp.lt.s32.totalorder %s302_s27, %s302_s27  ;;  %p1100_p4 = scmp.lt.s32.totalorder %s1098_s21, %s1091_s20 }
  0x1a   : > { %p1094_p1 = pnand %p1092_p0, %p1415_p13 }
  0x1b   : > { %p1101_p7 = por %p1100_p4, %p1099_p3 }
  0x1c   : > { %p1095_p2 = pneg %p1094_p1 }
  0x1e   : > { %p1102_p8 = pnand %p1101_p7, %p1095_p2 }
  0x20   : > { %1105 = shalt.err (!%p1102_p8)
}
  0x21   : > { %s1590_s3 = sld [smem:[#allocation16_spill]]  ;;  %s1117_s11 = scalar_lea.vmem %s1411_s29, 128 }
  0x22   : > { %p1118_p11 = scmp.ne.s32.totalorder %s1411_s29, %s1117_s11  ;;  %p1125_p9 = scmp.lt.s32.totalorder %s1411_s29, %s1411_s29 }
  0x23   : > { %p1126_p3 = scmp.lt.s32.totalorder %s1117_s11, %s1117_s11 }
  0x24   : > { %p1120_p0 = pnand %p1118_p11, %p1415_p13 }
  0x25   : > { %p1127_p2 = por %p1126_p3, %p1125_p9 }
  0x26   : > { %p1121_p1 = pneg %p1120_p0 }
  0x27   : > { %1006 = dma.hbm_to_vmem [thread:$0]  (!%p1407_p12), %s1590_s3, 16, %s302_s27, [#allocation6]  }
  0x28   : > { %p1128_p4 = pnand %p1127_p2, %p1121_p1 }
  0x2a   : > { %1131 = shalt.err (!%p1128_p4)
}
  0x2b   : > { %s1287_s20 = smov 64   ;;  %s1288_s21 = smov 4  }
  0x2c   : > { %1012 = dma.hbm_to_vmem [thread:$0]  (!%p1407_p12), %s1577_s6, 128, %s1411_s29, [#allocation9], %s1287_s20, %s1287_s20, %s1288_s21  }
  0x2d   : > { %s1143_s27 = scalar_lea.vmem %s291_s12, 64  ;;  %p1151_p0 = scmp.lt.s32.totalorder %s291_s12, %s291_s12 }
  0x2e   : > { %p1144_p7 = scmp.ne.s32.totalorder %s291_s12, %s1143_s27  ;;  %p1152_p9 = scmp.lt.s32.totalorder %s1143_s27, %s1143_s27 }
  0x30   : > { %p1146_p8 = pnand %p1144_p7, %p1415_p13  ;;  %p1153_p1 = por %p1152_p9, %p1151_p0 }
  0x32   : > { %p1147_p11 = pneg %p1146_p8 }
  0x34   : > { %p1154_p3 = pnand %p1153_p1, %p1147_p11 }
  0x36   : > { %1157 = shalt.err (!%p1154_p3)
}
  0x37   : > { %1003 = dma.hbm_to_vmem [thread:$0]  (!%p1407_p12), %s1573_s2, 64, %s291_s12, [#allocation3]  }
  0x38   : > { %s1289_s26 = smov [#allocation7]   ;;  %s1290_s20 = smov [#allocation10]  }
  0x39   : > { %s315_s29 = sshll.u32 %s1289_s26, 4  ;;  %s339_s21 = sshll.u32 %s1290_s20, 4  ;;  %s316_s29 = int_to_ptr.vmem [resolvable:$true] %s315_s29  ;;  %s340_s21 = int_to_ptr.vmem [resolvable:$true] %s339_s21 }
  0x3a   : > { %s1169_s28 = scalar_lea.vmem %s316_s29, 16  ;;  %s1176_s27 = scalar_lea.vmem %s316_s29, 32 }
  0x3b   : > { %p1170_p2 = scmp.ne.s32.totalorder %s316_s29, %s1169_s28  ;;  %p1177_p8 = scmp.lt.s32.totalorder %s316_s29, %s316_s29 }
  0x3c   : > { %p1178_p11 = scmp.lt.s32.totalorder %s1176_s27, %s1169_s28 }
  0x3d   : > { %p1172_p4 = pnand %p1170_p2, %p1415_p13 }
  0x3e   : > { %p1179_p0 = por %p1178_p11, %p1177_p8 }
  0x3f   : > { %p1173_p7 = pneg %p1172_p4 }
  0x41   : > { %p1180_p9 = pnand %p1179_p0, %p1173_p7 }
  0x43   : > { %1183 = shalt.err (!%p1180_p9)
}
  0x44   : > { %1009 = dma.hbm_to_vmem [thread:$0]  (!%p1407_p12), %s1576_s5, 16, %s316_s29, [#allocation6]  }
  0x45   : > { %s1195_s11 = scalar_lea.vmem %s340_s21, 16  ;;  %s1202_s26 = scalar_lea.vmem %s340_s21, 32 }
  0x46   : > { %p1196_p1 = scmp.ne.s32.totalorder %s340_s21, %s1195_s11  ;;  %p1203_p4 = scmp.lt.s32.totalorder %s340_s21, %s340_s21 }
  0x47   : > { %p1204_p6 = scmp.lt.s32.totalorder %s1202_s26, %s1195_s11 }
  0x48   : > { %p1198_p3 = pnand %p1196_p1, %p1415_p13 }
  0x49   : > { %p1205_p5 = por %p1204_p6, %p1203_p4 }
  0x4a   : > { %p1199_p2 = pneg %p1198_p3 }
  0x4c   : > { %p1206_p8 = pnand %p1205_p5, %p1199_p2 }
  0x4e   : > { %1209 = shalt.err (!%p1206_p8)
}
  0x4f   : > { %1015 = dma.hbm_to_vmem [thread:$0]  (!%p1407_p12), %s1578_s7, 16, %s340_s21, [#allocation9]  }
  0x50   : > { %372 = sbr.rel (%p1399_p10) target bundleno = 1220 (0x4c4), region = 60  ;;  %p1591_p7 = scmp.eq.s32.totalorder (!%p1399_p10), %s1371_s17, 0 }
  0x55   : > { %1253 = dma.done.wait (%p1591_p7), [#allocation3], 64   ;;  %p1592_p13 = pmov %p1591_p7 }
  0x56   : > { %p1593_p11 = pmov %p1591_p7 }
  0x57   : > { %1255 = vsyncadd (%p1592_p13), [#allocation3], 4294967232 }
  0x58   : > { %1257 = dma.done.wait (%p1593_p11), [#allocation6], 32   ;;  %p1594_p5 = pmov %p1591_p7 }
  0x5a   : > { %1259 = vsyncadd (%p1594_p5), [#allocation6], 4294967264  ;;  %p1595_p6 = pmov %p1594_p5 }
  0x5b   : > { %p1596_p12 = pmov %p1594_p5 }
  0x5c   : > { %1261 = dma.done.wait (%p1595_p6), [#allocation9], 144  }
  0x5d   : > { %1263 = vsyncadd (%p1596_p12), [#allocation9], 4294967152  ;;  %p429_p10 = scmp.lt.s32.totalorder %s1371_s17, 1  ;;  %v1291_v0 = vmov 0.0   ;;  %vm1292_vm0 = vmmov 0   ;;  %vm451_vm1 = vcmask 1043456  }
  0x5e   : > { %942 = vmatprep.subr.bf16.mxu0 %v1291_v0  ;;  %944 = vmatprep.mubr.msk.bf16.mxu0 %vm1292_vm0, %v1291_v0  ;;  %v439_v1 = vld [vmem:[#allocation2] sm:$0xf]  ;;  %vm447_vm2 = vcmask 64512   ;;  %v1073_v4 = vld [vmem:[%s1575_s4 + $0x8] sm:$0xff]   ;;  %v1074_v5 = vld [vmem:[%s1575_s4] sm:$0xff]   ;;  %vm520_vm3 = vcmask 261120  }
  0x5f   : > { %s1478_s25 = scalar_select %p429_p10, %s1371_s17, 1  ;;  %948 = vmatprep.subr.bf16.mxu1 %v1291_v0  ;;  %952 = vmatprep.mubr.msk.bf16.mxu1 %vm1292_vm0, %v1291_v0  ;;  %v453_v3 = vsel %vm451_vm1, %v439_v1, 0  ;;  %v1075_v6 = vld [vmem:[#allocation8] sm:$0xff]   ;;  %v909_v7 = vld [vmem:[#allocation5] ss:$0 sm:$0xff]  ;;  %v1076_v15 = vld [vmem:[%s1579_s8 + $0x8] sm:$0xff]  }
  0x60   : > { %943 = vmatpush3.bf16.msra.mxu0 %v453_v3  ;;  %949 = vmatpush3.bf16.msra.mxu1 %v1073_v4  ;;  %v911_v16 = vld [vmem:[#allocation7] ss:$0 sm:$0xff]  ;;  %vm581_vm4 = vcmask 130048   ;;  %v1077_v24 = vld [vmem:[%s1579_s8] sm:$0xff]   ;;  %v1078_v33 = vld [vmem:[%s1580_s9 + $0x8] sm:$0xff]   ;;  %s1293_s3 = smov 96  }
  0x61   : > { %s907_s30 = sshll.u32 %s1478_s25, 2  ;;  %956 = vmatprep.subr.bf16.mxu0 %v1291_v0  ;;  %950 = vmatprep.subr.bf16.mxu1 %v1291_v0  ;;  %v915_v25 = vld [vmem:[#allocation10] ss:$0 sm:$0xff]  ;;  %s908_s12 = sshll.u32 %s1478_s25, 3 }
  0x62   : > { %s432_s21 = scalar_lea.vmem %s1571_s0, %s907_s30  ;;  %v1079_v34 = vld [vmem:[%s1580_s9] sm:$0xff]   ;;  %s436_s20 = scalar_lea.vmem %s1572_s1, %s908_s12 }
  0x63   : > { %v438_v2 = vld [vmem:[%s432_s21] sm:$0xf]  ;;  %s426_s28 = sand.u32 1, %s1274_s14   ;;  %s926_s18 = sshll.u32 %s1371_s17, 6 }
  0x64   : > { %945 = vmatmul.mubr.msk.bf16.vlgmr.msra.gmra.mxu0 %vm447_vm2, %v438_v2  ;;  %951 = vmatpush3.bf16.msra.mxu1 %v1074_v5  ;;  %v686_v39 = vld [vmem:[%s436_s20] sm:$0xff]  ;;  %s906_s30 = sshll.u32 %s426_s28, 2  ;;  %s758_s12 = scalar_lea.sflag [#allocation4], %s426_s28 }
  0x65   : > { %958 = vmatprep.mubr.msk.bf16.mxu0 %vm1292_vm0, %v1291_v0  ;;  %962 = vmatprep.subr.bf16.mxu1 %v1291_v0  ;;  %s428_s29 = scalar_lea.vmem [#allocation11], %s906_s30  ;;  %p1597_p9 = scmp.ne.s32.totalorder %s1585_s23, 0 }
  0x66   : > { %957 = vmatpush3.bf16.msra.mxu0 %v1075_v6  ;;  %s771_s21 = sshll.u32 %s428_s29, 4  ;;  %s1294_s17 = smov [#allocation11]   ;;  %s1532_s21 = int_to_ptr.vmem [resolvable:$true] %s771_s21 }
  0x67   : > { %970 = vmatprep.subr.bf16.mxu0 %v1291_v0  ;;  %s1210_s11 = scalar_lea.vmem %s1532_s21, 64  ;;  %s1214_s26 = sshll.u32 %s1294_s17, 4  ;;  %s1215_s26 = int_to_ptr.vmem [resolvable:$false] %s1214_s26 }
  0x68   : > { %p1211_p0 = scmp.ne.s32.totalorder %s1532_s21, %s1210_s11  ;;  %s1216_s20 = scalar_lea.vmem %s1215_s26, 128 }
  0x69   : > { %p1217_p2 = scmp.lt.s32.totalorder %s1532_s21, %s1215_s26  ;;  %p1218_p4 = scmp.lt.s32.totalorder %s1216_s20, %s1210_s11 }
  0x6a   : > { %p1212_p1 = pnand %p1211_p0, %p1597_p9 }
  0x6b   : > { %p1219_p8 = por %p1218_p4, %p1217_p2 }
  0x6c   : > { %p1213_p3 = pneg %p1212_p1 }
  0x6e   : > { %p1220_p7 = pnand %p1219_p8, %p1213_p3 }
 0x124   : > { %v489_v8 = vpop.f32.mrf.mxu0 }
 0x125   : > { %v490_v9 = vadd.f32 %v909_v7, %v489_v8 }
 0x126   : > { %v946_v10 = vpop.f32.mrf.mxu0 }
 0x127   : > { %v495_v11 = vmax.f32 %v490_v9, 0.0 }
 0x128   : > { %v492_v12 = vpop.f32.mrf.mxu0 }
 0x129   : > { %v496_v13 = vpack.c.bf16 %v495_v11, %v495_v11 }
 0x12a   : > { %v947_v14 = vpop.f32.mrf.mxu0 }
 0x12b   : > { %953 = vmatmul.mubr.msk.bf16.vlgmr.msra.gmra.mxu1 %vm520_vm3, %v496_v13 }
 0x12c   : > { %966 = vmatprep.mubr.msk.bf16.mxu1 %vm1292_vm0, %v1291_v0  ;;  %963 = vmatpush3.bf16.msra.mxu1 %v1076_v15 }
 0x12d   : > { %964 = vmatprep.subr.bf16.mxu1 %v1291_v0 }
 0x130   : > { %965 = vmatpush3.bf16.msra.mxu1 %v1077_v24 }
 0x1eb   : > { %v558_v17 = vpop.f32.mrf.mxu1 }
 0x1ec   : > { %v559_v18 = vadd.f32 %v911_v16, %v558_v17 }
 0x1ed   : > { %v954_v19 = vpop.f32.mrf.mxu1 }
 0x1ee   : > { %v564_v20 = vmax.f32 %v559_v18, 0.0 }
 0x1ef   : > { %v561_v21 = vpop.f32.mrf.mxu1 }
 0x1f0   : > { %v565_v22 = vpack.c.bf16 %v564_v20, %v564_v20 }
 0x1f1   : > { %v955_v23 = vpop.f32.mrf.mxu1 }
 0x1f2   : > { %959 = vmatmul.mubr.msk.bf16.vlgmr.msra.gmra.mxu0 %vm581_vm4, %v565_v22 }
 0x1f3   : > { %974 = vmatprep.mubr.msk.bf16.mxu0 %vm1292_vm0, %v1291_v0  ;;  %971 = vmatpush3.bf16.msra.mxu0 %v1078_v33 }
 0x1f4   : > { %972 = vmatprep.subr.bf16.mxu0 %v1291_v0 }
 0x1f7   : > { %973 = vmatpush3.bf16.msra.mxu0 %v1079_v34 }
 0x2b2   : > { %v619_v26 = vpop.f32.mrf.mxu0 }
 0x2b3   : > { %v620_v27 = vadd.f32 %v915_v25, %v619_v26 }
 0x2b4   : > { %v960_v28 = vpop.f32.mrf.mxu0 }
 0x2b5   : > { %v625_v29 = vmax.f32 %v620_v27, 0.0 }
 0x2b6   : > { %v622_v30 = vpop.f32.mrf.mxu0 }
 0x2b7   : > { %v626_v31 = vpack.c.bf16 %v625_v29, %v625_v29 }
 0x2b8   : > { %v961_v32 = vpop.f32.mrf.mxu0 }
 0x2b9   : > { %967 = vmatmul.mubr.msk.bf16.vlgmr.msra.gmra.mxu1 %vm520_vm3, %v626_v31 }
 0x379   : > { %v680_v35 = vpop.f32.mrf.mxu1 }
 0x37a   : > { %688 = vrot.lane.b32.xlu0 %v680_v35, %s1293_s3  ;;  %s1530_s3 = scalar_lea.hbm %s1581_s10, %s926_s18 }
 0x37b   : > { %v968_v36 = vpop.f32.mrf.mxu1 }
 0x37d   : > { %v683_v37 = vpop.f32.mrf.mxu1 }
 0x37f   : > { %v969_v38 = vpop.f32.mrf.mxu1 }
 0x3ec   : > { %v689_v40 = vpop.permute.xlu0 %688 }
 0x3ed   : > { %v691_v41 = vmul.f32 %v689_v40, %v686_v39 }
 0x3ef   : > { %vm692_vm5 = vcmp.lt.f32.partialorder %v680_v35, %v691_v41 }
 0x3f0   : > { %v921_v42 = vsel %vm692_vm5, 1.0, %v1291_v0 }
 0x3f1   : > { %v695_v43 = vpack.c.bf16 %v921_v42, %v921_v42 }
 0x3f3   : > { %975 = vmatmul.mubr.msk.bf16.vlgmr.msra.gmra.mxu0 %vm520_vm3, %v695_v43 }
 0x4b3   : > { %v749_v44 = vpop.f32.mrf.mxu0 }
 0x4b4   : > { %v755_v45 = vpack.c.bf16 %v749_v44, %v749_v44 }
 0x4b5   : > { %v976_v46 = vpop.f32.mrf.mxu0 }
 0x4b6   : > { %756 = vst [vmem:[%s428_s29] sm:$0xf] %v755_v45 }
 0x4b7   : > { %v752_v47 = vpop.f32.mrf.mxu0 }
 0x4b8   : > { %1223 = shalt.err (!%p1220_p7)
}
 0x4b9   : > { %s1224_s30 = scalar_lea.hbm %s1530_s3, 64  ;;  %s1228_s29 = scalar_lea.hbm %s1581_s10, 128 }
 0x4ba   : > { %p1225_p13 = scmp.ne.s32.totalorder %s1530_s3, %s1224_s30  ;;  %p1229_p6 = scmp.lt.s32.totalorder %s1530_s3, %s1581_s10 }
 0x4bb   : > { %p1230_p12 = scmp.lt.s32.totalorder %s1228_s29, %s1224_s30 }
 0x4bc   : > { %p1226_p11 = pnand %p1225_p13, %p1597_p9 }
 0x4bd   : > { %p1231_p10 = por %p1230_p12, %p1229_p6 }
 0x4be   : > { %p1227_p5 = pneg %p1226_p11 }
 0x4c0   : > { %p1232_p0 = pnand %p1231_p10, %p1227_p5 }
 0x4c2   : > { %1235 = shalt.err (!%p1232_p0)
}
 0x4c3   : > { %998 = dma.vmem_to_hbm [thread:$0]  (%p1597_p9), %s1532_s21, 64, %s1530_s3, %s758_s12   ;;  %v977_v48 = vpop.f32.mrf.mxu0 }
 0x4c4 PF: > { %p1030_p1 = scmp.ge.s32.totalorder %s1282_s16, 2  ;;  %s783_s11 = sand.u32 1, %s1270_s13  }
 0x4c5   : > { %p1598_p3 = scmp.ne.s32.totalorder %s1586_s24, 0  ;;  %s784_s17 = scalar_lea.sflag [#allocation4], %s783_s11 }
 0x4c7   : > { %p1017_p2 = pnand %p1030_p1, %p1598_p3 }
 0x4c9   : > { %p1018_p4 = pneg %p1017_p2 }
 0x4cb   : > { %1265 = dma.done.wait (%p1018_p4), %s784_s17, 64  }
 0x4cc   : > { %1267 = vsyncadd (%p1018_p4), %s784_s17, 4294967232  ;;  %p23_p8 = scmp.ge.s32.totalorder %s1375_s19, 4   ;;  %s1599_s13 = smov %s1274_s14 }
 0x4cd   : > { %s1600_s14 = smov %s1278_s15  ;;  %s1601_s15 = smov %s1386_s22 }
 0x4ce   : > { %s1602_s16 = smov %s1375_s19  ;;  %25 = sbr.rel (!%p23_p8) target bundleno = 8 (0x8), region = 119 }
 0x4d3   :  { %789 = vsyncpa [#allocation3], 1 }
 0x4d4   :  { %791 = vsyncpa [#allocation3 + $0x1], 1 }
 0x4d5   :  { %792 = vsyncpa [#allocation6], 1 }
 0x4d6   :  { %793 = vsyncpa [#allocation9], 1 }
 0x4d7   :  { %794 = vsyncpa [#allocation4], 1 }
 0x4d8   :  { %796 = vsyncpa [#allocation4 + $0x1], 1 }

</bundles_post_ra>
